<compile_context>
chip_gen: v6e
topology: v6e:2x2x1
jax: 0.10.0
libtpu: 0.0.40
codegen_flags: <defaults>
</compile_context>

<pallas_src>
import jax
import jax.numpy as jnp
from jax.experimental import pallas as pl
from jax.experimental.pallas import tpu as pltpu


_TARGET_BLOCK_BYTES = 2 * 1024 * 1024   # ~2 MiB per x-block (roofline sweet spot)


def _pos_embs_kernel(x_ref, pos_ref, o_ref):
    # x_ref: (Bt, Rt) tile of the input; pos_ref: (1, Rt) broadcast over the
    # Bt batch rows on the VPU. Add in the promoted dtype, store in out dtype.
    o_ref[...] = (x_ref[...] + pos_ref[...]).astype(o_ref.dtype)


def _choose_tiles(B, row, itemsize):
    """Pick (batch_tile, row_tile) obeying the (8, 128) block rules.

    Preference order:
      1. Full lane-dense rows, batch tile grown toward ~2 MiB blocks.
      2. If even the minimal legal batch tile of full rows is too big,
         tile the row dimension in 128-lane multiples instead.
    """
    row_bytes = row * itemsize
    bt_min = B if B < 8 else 8                    # smallest legal sublane tile

    # Case 1: full rows (allow up to 2x target before falling back to row tiling).
    if bt_min * row_bytes <= 2 * _TARGET_BLOCK_BYTES:
        bt = max(bt_min, (_TARGET_BLOCK_BYTES // max(row_bytes, 1)) // 8 * 8)
        bt = B if bt >= B else bt
        return bt, row

    # Case 2: tile the row dim; keep the batch tile minimal (8, or full B<8).
    rt = max(128, (_TARGET_BLOCK_BYTES // (bt_min * itemsize)) // 128 * 128)
    if rt >= row:
        return bt_min, row
    return bt_min, rt


def position_embs(x, pos_embedding):
    """out = x + pos_embedding (broadcast over batch); dropout = identity (eval)."""
    B, S, D = x.shape
    assert pos_embedding.shape == (1, S, D), (pos_embedding.shape, (1, S, D))

    # Output dtype follows standard type promotion (matches PyTorch:
    # bf16 x + f32 param -> f32 out). Same-dtype inputs: no-op.
    out_dtype = jnp.promote_types(x.dtype, pos_embedding.dtype)

    # Lane-dense 2-D view: last dim = S*D (full extent -> no masked partial
    # stores per D-row when D < 128, and no (8,128) constraint when untile-d).
    row = S * D
    x2 = x.reshape(B, row)
    pos2 = pos_embedding.reshape(1, row)

    x_isz = jnp.dtype(x.dtype).itemsize
    pos_isz = jnp.dtype(pos_embedding.dtype).itemsize
    out_isz = jnp.dtype(out_dtype).itemsize

    bt, rt = _choose_tiles(B, row, x_isz)
    grid = (pl.cdiv(B, bt), pl.cdiv(row, rt))

    # VMEM estimate: x, out and pos blocks, each double-buffered by the pipeline.
    vmem_estimate = 2 * bt * rt * (x_isz + out_isz) + 2 * rt * pos_isz
    cp_kwargs = dict(dimension_semantics=("parallel", "parallel"))
    if vmem_estimate > 12 * 1024 * 1024:
        # Raise the scoped-VMEM limit (v5e default is only 16 MiB) but stay
        # comfortably below v7x's 64 MiB physical VMEM.
        cp_kwargs["vmem_limit_bytes"] = min(
            int(vmem_estimate * 5 // 4) + (1 << 20), 48 * 1024 * 1024)
    compiler_params = pltpu.CompilerParams(**cp_kwargs)

    # Alias x's buffer to the output (elementwise; legal only when dtypes match).
    io_aliases = {0: 0} if out_dtype == x.dtype else {}

    cost = pl.CostEstimate(
        flops=B * S * D,
        transcendentals=0,
        bytes_accessed=(x2.size * x_isz + pos2.size * pos_isz + B * row * out_isz),
    )

    out2 = pl.pallas_call(
        _pos_embs_kernel,
        out_shape=jax.ShapeDtypeStruct((B, row), out_dtype),
        grid_spec=pltpu.PrefetchScalarGridSpec(
            num_scalar_prefetch=0,
            grid=grid,
            in_specs=[
                # Bt batch rows x Rt lanes of the input per grid step.
                pl.BlockSpec((bt, rt), lambda b, r: (b, r)),
                # Positional embedding: batch-invariant block index -> the same
                # row slice is reused across all batch tiles.
                pl.BlockSpec((1, rt), lambda b, r: (0, r)),
            ],
            out_specs=pl.BlockSpec((bt, rt), lambda b, r: (b, r)),
        ),
        compiler_params=compiler_params,
        input_output_aliases=io_aliases,
        cost_estimate=cost,
    )(x2, pos2)

    return out2.reshape(B, S, D)


if __name__ == "__main__":
    # Small shapes consistent with the module:
    #   num_patches = 16  -> sequence length S = num_patches + 1 = 17
    #   emb_dim     = 32
    #   batch       = 2
    num_patches = 16
    emb_dim = 32
    batch = 2
    S = num_patches + 1

    key = jax.random.PRNGKey(0)
    k_x, k_pos = jax.random.split(key)

    x = jax.random.normal(k_x, (batch, S, emb_dim), dtype=jnp.float32)
    # Deterministic parameter init mirroring torch.randn(1, num_patches + 1, emb_dim)
    pos_embedding = jax.random.normal(k_pos, (1, S, emb_dim), dtype=jnp.float32)

    out = position_embs(x, pos_embedding)
    out = jax.block_until_ready(out)

    # Sanity check against plain-JAX reference (eval-mode dropout = identity)
    ref = x + pos_embedding
    assert out.shape == (batch, S, emb_dim)
    assert out.dtype == ref.dtype
    assert jnp.allclose(out, ref, atol=1e-6), "mismatch vs reference"

    print("KERNEL_OK")
</pallas_src>

<mosaic_0001>
module attributes {stable_mosaic.version = 11 : i64} {
  func.func @_pos_embs_kernel(%arg0: i32, %arg1: i32, %arg2: memref<2x544xf32, #tpu.memory_space<vmem>>, %arg3: memref<1x544xf32, #tpu.memory_space<vmem>>, %arg4: memref<2x544xf32, #tpu.memory_space<vmem>>) attributes {dimension_semantics = [#tpu.dimension_semantics<parallel>, #tpu.dimension_semantics<parallel>], iteration_bounds = array<i64: 1, 1>, scalar_prefetch = 0 : i64, scratch_operands = 0 : i64, tpu.core_type = #tpu.core_type<tc>, window_params = [{transform_indices = @transform_0, window_bounds = array<i64: 2, 544>}, {transform_indices = @transform_1, window_bounds = array<i64: 1, 544>}, {transform_indices = @transform_2, window_bounds = array<i64: 2, 544>}]} {
    %c0 = arith.constant 0 : index
    %c0_0 = arith.constant 0 : index
    %0 = vector.load %arg2[%c0, %c0_0] : memref<2x544xf32, #tpu.memory_space<vmem>>, vector<2x544xf32>
    %c0_1 = arith.constant 0 : index
    %c0_2 = arith.constant 0 : index
    %1 = vector.load %arg3[%c0_1, %c0_2] : memref<1x544xf32, #tpu.memory_space<vmem>>, vector<1x544xf32>
    %2 = vector.broadcast %1 : vector<1x544xf32> to vector<2x544xf32>
    %3 = arith.addf %0, %2 : vector<2x544xf32>
    %c0_3 = arith.constant 0 : index
    %c0_4 = arith.constant 0 : index
    %4 = vector.load %arg4[%c0_3, %c0_4] : memref<2x544xf32, #tpu.memory_space<vmem>>, vector<2x544xf32>
    tpu.vector_store %arg4[%c0_3, %c0_4], %3 {strides = array<i32>} : memref<2x544xf32, #tpu.memory_space<vmem>>, vector<2x544xf32>,
    return
  }
  func.func @transform_0(%arg0: i32, %arg1: i32) -> (i32, i32) {
    %c0_i32 = arith.constant 0 : i32
    return %arg0, %arg1 : i32, i32
  }
  func.func @transform_1(%arg0: i32, %arg1: i32) -> (i32, i32) {
    %c0_i32 = arith.constant 0 : i32
    %c0_i32_0 = arith.constant 0 : i32
    return %c0_i32, %arg1 : i32, i32
  }
  func.func @transform_2(%arg0: i32, %arg1: i32) -> (i32, i32) {
    %c0_i32 = arith.constant 0 : i32
    return %arg0, %arg1 : i32, i32
  }
}

</mosaic_0001>

<bundles_post_ra>
// kernel: tpu_custom_call.1
= control target key start
LH: loop header
LB: loop body
LE: loop exit
PB: predicated region body
PF: predicated region fallthrough
CT: control target
= control target key end

     0   :  { %7 = vsyncpa [#allocation3], 0  ;;  %s168_s0 = inlined_call_operand.hbm [shape: f32[2,544], index: 0, kind: input, shape index: {}, may-alias: {0,2}]   ;;  %s169_s1 = inlined_call_operand.vmem [shape: f32[1,544], index: 1, kind: input, shape index: {}]   ;;  %s170_s2 = inlined_call_operand.hbm [shape: f32[2,544], index: 2, kind: output, shape index: {}, may-alias: {0,2}]  }
   0x1   :  { %8 = vsyncpa [#allocation4], 0  ;;  %s141_s9 = smov [#allocation2]  }
   0x2   :  { %s15_s10 = sshll.u32 %s141_s9, 4  ;;  %s16_s10 = int_to_ptr.vmem [resolvable:$true] %s15_s10 }
   0x3   :  { %s105_s11 = scalar_lea.vmem %s16_s10, 160  ;;  %p110_p1 = scmp.lt.s32.totalorder %s16_s10, %s16_s10 }
   0x4   :  { %p106_p0 = scmp.ne.s32.totalorder %s16_s10, %s105_s11  ;;  %p111_p2 = scmp.lt.s32.totalorder %s105_s11, %s105_s11 }
   0x6   :  { %p112_p3 = por %p111_p2, %p110_p1 }
   0x8   :  { %p113_p4 = pnand %p112_p3, %p106_p0 }
   0xa   :  { %116 = shalt.err (!%p113_p4)
}
   0xb   :  { %18 = dma.hbm_to_vmem [thread:$0]  %s168_s0, 160, %s16_s10, [#allocation3]  }
   0xc   :  { %137 = dma.done.wait [#allocation3], 160  }
   0xd   :  { %138 = vsyncadd [#allocation3], 4294967136  ;;  %v28_v0 = vlaneseq  ;;  %v142_v1 = vmov 1983009808   ;;  %v26_v10 = vld [vmem:[%s169_s1] sm:$0x1f] }
   0xe   :  { %v51_v2 = vunpack.c.l.s4 %v142_v1  ;;  %v25_v19 = vld [vmem:[#allocation2 + $0x8] sm:$0x3]  ;;  %vm77_vm0 = vcmask 254976   ;;  %v24_v23 = vld [vmem:[#allocation2] sm:$0xff]  ;;  %s143_s0 = smov [#allocation5]  }
   0xf   :  { %v29_v3 = vshrl.u32 %v28_v0, 7  ;;  %s85_s16 = sshll.u32 %s143_s0, 4  ;;  %s86_s16 = int_to_ptr.vmem [resolvable:$true] %s85_s16 }
  0x10   :  { %v52_v4 = vunpack.c.0.s8 %v51_v2  ;;  %s117_s1 = scalar_lea.vmem %s86_s16, 160  ;;  %p122_p6 = scmp.lt.s32.totalorder %s86_s16, %s86_s16 }
  0x11   :  { %v30_v5 = vsub.s32 0, %v29_v3  ;;  %v34_v6 = vsub.s32 1, %v29_v3  ;;  %v38_v7 = vsub.s32 2, %v29_v3  ;;  %v42_v8 = vsub.s32 3, %v29_v3  ;;  %p118_p5 = scmp.ne.s32.totalorder %s86_s16, %s117_s1  ;;  %p123_p7 = scmp.lt.s32.totalorder %s117_s1, %s117_s1 }
  0x12   :  { %v46_v9 = vsub.s32 4, %v29_v3  ;;  %v55_v11 = vsub.s32 %v52_v4, %v29_v3 }
  0x13   :  { %v31_v12 = vrot.slane %v26_v10, %v30_v5  ;;  %v35_v13 = vrot.slane %v26_v10, %v34_v6  ;;  %v39_v14 = vrot.slane %v26_v10, %v38_v7  ;;  %v43_v15 = vrot.slane %v26_v10, %v42_v8  ;;  %p124_p8 = por %p123_p7, %p122_p6 }
  0x14   :  { %v47_v16 = vrot.slane %v26_v10, %v46_v9 }
  0x15   :  { %v48_v17 = vcombine.low %v31_v12, %v35_v13  ;;  %v49_v18 = vcombine.low %v39_v14, %v43_v15  ;;  %p125_p9 = pnand %p124_p8, %p118_p5 }
  0x16   :  { %v71_v20 = vrot.slane %v47_v16, %v55_v11 }
  0x17   :  { %v56_v21 = vrot.slane %v48_v17, %v55_v11  ;;  %v63_v22 = vrot.slane %v49_v18, %v55_v11 }
  0x18   :  { %v75_v24 = vadd.f32 %v71_v20, %v25_v19 }
  0x19   :  { %v64_v25 = vcombine.low %v56_v21, %v63_v22 }
  0x1a   :  { %78 = vst.msk [vmem:[#allocation5 + $0x8] sm:$0x3] %vm77_vm0, %v75_v24 }
  0x1b   :  { %v74_v26 = vadd.f32 %v64_v25, %v24_v23 }
  0x1d   :  { %76 = vst [vmem:[#allocation5] sm:$0xff] %v74_v26 }
  0x1e   :  { %128 = shalt.err (!%p125_p9)
}
  0x1f   :  { %88 = dma.vmem_to_hbm [thread:$0]  %s86_s16, 160, %s170_s2, [#allocation4]  }
  0x20   :  { %139 = dma.done.wait [#allocation4], 160  }
  0x21   :  { %140 = vsyncadd [#allocation4], 4294967136 }
  0x22   :  { %92 = vsyncpa [#allocation3], 1 }
  0x23   :  { %93 = vsyncpa [#allocation4], 1 }

</bundles_post_ra>
